<compile_context>
chip_gen: v7x
topology: tpu7x:2x2x1
jax: 0.10.0
libtpu: 0.0.40
codegen_flags: <defaults>
</compile_context>

<pallas_src>
import jax
import jax.numpy as jnp
from jax.experimental import pallas as pl
from jax.experimental.pallas import tpu as pltpu

LANE = 128


def _round_up(n, m):
    return ((n + m - 1) // m) * m


def mlp_kernel(x_ref,
               w1_ref, b1_ref,
               w2_ref, b2_ref,
               w3_ref, b3_ref,
               w4_ref, b4_ref,
               o_ref):
    # MXU matmuls take bf16 inputs, accumulate in f32; bias add + tanh in f32.
    # TODO(synk): on v6e/v7x a bf16 tanh (or VPU rational approx) would relieve
    # the single EUP slot; kept f32 here for v5e compatibility.
    h = jnp.tanh(jnp.dot(x_ref[...], w1_ref[...],
                         preferred_element_type=jnp.float32) + b1_ref[...])
    h = jnp.tanh(jnp.dot(h.astype(jnp.bfloat16), w2_ref[...],
                         preferred_element_type=jnp.float32) + b2_ref[...])
    h = jnp.tanh(jnp.dot(h.astype(jnp.bfloat16), w3_ref[...],
                         preferred_element_type=jnp.float32) + b3_ref[...])
    o_ref[...] = (jnp.dot(h.astype(jnp.bfloat16), w4_ref[...],
                          preferred_element_type=jnp.float32)
                  + b4_ref[...]).astype(o_ref.dtype)


def init_linear(key, fan_in, fan_out):
    # PyTorch nn.Linear default init: U(-1/sqrt(fan_in), 1/sqrt(fan_in)).
    kw, kb = jax.random.split(key)
    bound = 1.0 / jnp.sqrt(jnp.float32(fan_in))
    w = jax.random.uniform(kw, (fan_in, fan_out), jnp.float32, -bound, bound)
    b = jax.random.uniform(kb, (1, fan_out), jnp.float32, -bound, bound)
    return w, b


def prepare_params(params):
    """One-time prep: zero-pad every feature dim up to a multiple of 128 and
    cast weights to bf16 (biases stay f32). Padded channels are exactly zero
    and stay zero through tanh, so real outputs are unchanged."""
    prepped = []
    for w, b in params:
        fi, fo = w.shape
        fi_p, fo_p = _round_up(fi, LANE), _round_up(fo, LANE)
        w_p = jnp.zeros((fi_p, fo_p), jnp.bfloat16)
        w_p = w_p.at[:fi, :fo].set(w.astype(jnp.bfloat16))
        b_p = jnp.zeros((1, fo_p), jnp.float32)
        b_p = b_p.at[:, :fo].set(b.reshape(1, fo).astype(jnp.float32))
        prepped.append((w_p, b_p))
    return prepped


def mlp_pallas(x, prepped, tile_b=256):
    """x: [B, 96] f32.  prepped: output of prepare_params.  Returns [B, 3] f32."""
    (w1, b1), (w2, b2), (w3, b3), (w4, b4) = prepped
    B, D = x.shape
    d_in_p = w1.shape[0]      # 128
    d_out_p = w4.shape[1]     # 128 (lane-dense output slab)
    d_out = 3

    # Batch tile: multiple of 8 sublanes, capped at tile_b; pad batch to a multiple.
    tile = min(tile_b, _round_up(B, 8))
    b_pad = _round_up(B, tile)

    x_p = jnp.zeros((b_pad, d_in_p), jnp.bfloat16)
    x_p = x_p.at[:B, :D].set(x.astype(jnp.bfloat16))

    const_map = lambda i: (0, 0)

    def resident_spec(arr):
        # Full-array block, same block index every grid step -> stays in VMEM.
        return pl.BlockSpec(arr.shape, const_map)

    flops = 2 * b_pad * sum(int(w.shape[0]) * int(w.shape[1]) for w, _ in prepped)
    transcendentals = b_pad * (int(w1.shape[1]) + int(w2.shape[1]) + int(w3.shape[1]))
    bytes_accessed = (x_p.size * 2
                      + sum(int(w.size) * 2 + int(b.size) * 4 for w, b in prepped)
                      + b_pad * d_out_p * 4)

    out = pl.pallas_call(
        mlp_kernel,
        out_shape=jax.ShapeDtypeStruct((b_pad, d_out_p), jnp.float32),
        grid=(b_pad // tile,),
        in_specs=[
            pl.BlockSpec((tile, d_in_p), lambda i: (i, 0)),
            resident_spec(w1), resident_spec(b1),
            resident_spec(w2), resident_spec(b2),
            resident_spec(w3), resident_spec(b3),
            resident_spec(w4), resident_spec(b4),
        ],
        out_specs=pl.BlockSpec((tile, d_out_p), lambda i: (i, 0)),
        compiler_params=pltpu.CompilerParams(
            dimension_semantics=("parallel",)),
        cost_estimate=pl.CostEstimate(
            flops=int(flops),
            transcendentals=int(transcendentals),
            bytes_accessed=int(bytes_accessed)),
    )(x_p, w1, b1, w2, b2, w3, b3, w4, b4)

    return out[:B, :d_out]


def mlp_reference(x, params):
    h = x
    for i, (w, b) in enumerate(params):
        h = h @ w + b
        if i < len(params) - 1:
            h = jnp.tanh(h)
    return h


if __name__ == "__main__":
    key = jax.random.PRNGKey(0)
    k_x, k1, k2, k3, k4 = jax.random.split(key, 5)

    params = [
        init_linear(k1, 96, 200),
        init_linear(k2, 200, 150),
        init_linear(k3, 150, 150),
        init_linear(k4, 150, 3),
    ]
    prepped = prepare_params(params)   # pad + cast once, reuse across calls

    # Small-batch smoke test.
    B = 8
    x = jax.random.normal(k_x, (B, 96), jnp.float32)
    out = jax.block_until_ready(mlp_pallas(x, prepped))
    ref = mlp_reference(x, params)
    assert out.shape == (B, 3)
    assert jnp.allclose(out, ref, atol=5e-2, rtol=5e-2), \
        float(jnp.max(jnp.abs(out - ref)))

    # Larger batch exercising the tiled grid (grid > 1) and batch-padding path.
    B2 = 300
    x2 = jax.random.normal(k_x, (B2, 96), jnp.float32)
    out2 = jax.block_until_ready(mlp_pallas(x2, prepped, tile_b=128))
    ref2 = mlp_reference(x2, params)
    assert out2.shape == (B2, 3)
    assert jnp.allclose(out2, ref2, atol=5e-2, rtol=5e-2), \
        float(jnp.max(jnp.abs(out2 - ref2)))

    print("KERNEL_OK")
</pallas_src>

<mosaic_0001>
module attributes {stable_mosaic.version = 11 : i64} {
  func.func @mlp_kernel(%arg0: i32, %arg1: memref<8x128xbf16, #tpu.memory_space<vmem>>, %arg2: memref<128x256xbf16, #tpu.memory_space<vmem>>, %arg3: memref<1x256xf32, #tpu.memory_space<vmem>>, %arg4: memref<256x256xbf16, #tpu.memory_space<vmem>>, %arg5: memref<1x256xf32, #tpu.memory_space<vmem>>, %arg6: memref<256x256xbf16, #tpu.memory_space<vmem>>, %arg7: memref<1x256xf32, #tpu.memory_space<vmem>>, %arg8: memref<256x128xbf16, #tpu.memory_space<vmem>>, %arg9: memref<1x128xf32, #tpu.memory_space<vmem>>, %arg10: memref<8x128xf32, #tpu.memory_space<vmem>>) attributes {dimension_semantics = [#tpu.dimension_semantics<parallel>], iteration_bounds = array<i64: 1>, scalar_prefetch = 0 : i64, scratch_operands = 0 : i64, tpu.core_type = #tpu.core_type<tc>, window_params = [{transform_indices = @transform_0, window_bounds = array<i64: 8, 128>}, {pipeline_mode = #tpu.pipeline_mode<synchronous>, transform_indices = @transform_1, window_bounds = array<i64: 128, 256>}, {pipeline_mode = #tpu.pipeline_mode<synchronous>, transform_indices = @transform_2, window_bounds = array<i64: 1, 256>}, {pipeline_mode = #tpu.pipeline_mode<synchronous>, transform_indices = @transform_3, window_bounds = array<i64: 256, 256>}, {pipeline_mode = #tpu.pipeline_mode<synchronous>, transform_indices = @transform_4, window_bounds = array<i64: 1, 256>}, {pipeline_mode = #tpu.pipeline_mode<synchronous>, transform_indices = @transform_5, window_bounds = array<i64: 256, 256>}, {pipeline_mode = #tpu.pipeline_mode<synchronous>, transform_indices = @transform_6, window_bounds = array<i64: 1, 256>}, {pipeline_mode = #tpu.pipeline_mode<synchronous>, transform_indices = @transform_7, window_bounds = array<i64: 256, 128>}, {pipeline_mode = #tpu.pipeline_mode<synchronous>, transform_indices = @transform_8, window_bounds = array<i64: 1, 128>}, {transform_indices = @transform_9, window_bounds = array<i64: 8, 128>}]} {
    %c0 = arith.constant 0 : index
    %c0_0 = arith.constant 0 : index
    %0 = vector.load %arg1[%c0, %c0_0] : memref<8x128xbf16, #tpu.memory_space<vmem>>, vector<8x128xbf16>
    %c0_1 = arith.constant 0 : index
    %c0_2 = arith.constant 0 : index
    %1 = vector.load %arg2[%c0_1, %c0_2] : memref<128x256xbf16, #tpu.memory_space<vmem>>, vector<128x256xbf16>
    %cst = arith.constant dense<0.000000e+00> : vector<8x256xf32>
    %2 = tpu.matmul %0, %1, %cst {dimension_numbers = #tpu.dot_dimension_numbers<[1], [0], [0], [1], [0, 0, 1, 1], [], []>} : vector<8x128xbf16>, vector<128x256xbf16>, vector<8x256xf32> -> vector<8x256xf32>
    %c0_3 = arith.constant 0 : index
    %c0_4 = arith.constant 0 : index
    %3 = vector.load %arg3[%c0_3, %c0_4] : memref<1x256xf32, #tpu.memory_space<vmem>>, vector<1x256xf32>
    %4 = vector.broadcast %3 : vector<1x256xf32> to vector<8x256xf32>
    %5 = arith.addf %2, %4 : vector<8x256xf32>
    %6 = math.tanh %5 : vector<8x256xf32>
    %7 = arith.truncf %6 : vector<8x256xf32> to vector<8x256xbf16>
    %c0_5 = arith.constant 0 : index
    %c0_6 = arith.constant 0 : index
    %8 = vector.load %arg4[%c0_5, %c0_6] : memref<256x256xbf16, #tpu.memory_space<vmem>>, vector<256x256xbf16>
    %cst_7 = arith.constant dense<0.000000e+00> : vector<8x256xf32>
    %9 = tpu.matmul %7, %8, %cst_7 {dimension_numbers = #tpu.dot_dimension_numbers<[1], [0], [0], [1], [0, 0, 1, 1], [], []>} : vector<8x256xbf16>, vector<256x256xbf16>, vector<8x256xf32> -> vector<8x256xf32>
    %c0_8 = arith.constant 0 : index
    %c0_9 = arith.constant 0 : index
    %10 = vector.load %arg5[%c0_8, %c0_9] : memref<1x256xf32, #tpu.memory_space<vmem>>, vector<1x256xf32>
    %11 = vector.broadcast %10 : vector<1x256xf32> to vector<8x256xf32>
    %12 = arith.addf %9, %11 : vector<8x256xf32>
    %13 = math.tanh %12 : vector<8x256xf32>
    %14 = arith.truncf %13 : vector<8x256xf32> to vector<8x256xbf16>
    %c0_10 = arith.constant 0 : index
    %c0_11 = arith.constant 0 : index
    %15 = vector.load %arg6[%c0_10, %c0_11] : memref<256x256xbf16, #tpu.memory_space<vmem>>, vector<256x256xbf16>
    %cst_12 = arith.constant dense<0.000000e+00> : vector<8x256xf32>
    %16 = tpu.matmul %14, %15, %cst_12 {dimension_numbers = #tpu.dot_dimension_numbers<[1], [0], [0], [1], [0, 0, 1, 1], [], []>} : vector<8x256xbf16>, vector<256x256xbf16>, vector<8x256xf32> -> vector<8x256xf32>
    %c0_13 = arith.constant 0 : index
    %c0_14 = arith.constant 0 : index
    %17 = vector.load %arg7[%c0_13, %c0_14] : memref<1x256xf32, #tpu.memory_space<vmem>>, vector<1x256xf32>
    %18 = vector.broadcast %17 : vector<1x256xf32> to vector<8x256xf32>
    %19 = arith.addf %16, %18 : vector<8x256xf32>
    %20 = math.tanh %19 : vector<8x256xf32>
    %21 = arith.truncf %20 : vector<8x256xf32> to vector<8x256xbf16>
    %c0_15 = arith.constant 0 : index
    %c0_16 = arith.constant 0 : index
    %22 = vector.load %arg8[%c0_15, %c0_16] : memref<256x128xbf16, #tpu.memory_space<vmem>>, vector<256x128xbf16>
    %cst_17 = arith.constant dense<0.000000e+00> : vector<8x128xf32>
    %23 = tpu.matmul %21, %22, %cst_17 {dimension_numbers = #tpu.dot_dimension_numbers<[1], [0], [0], [1], [0, 0, 1, 1], [], []>} : vector<8x256xbf16>, vector<256x128xbf16>, vector<8x128xf32> -> vector<8x128xf32>
    %c0_18 = arith.constant 0 : index
    %c0_19 = arith.constant 0 : index
    %24 = vector.load %arg9[%c0_18, %c0_19] : memref<1x128xf32, #tpu.memory_space<vmem>>, vector<1x128xf32>
    %25 = vector.broadcast %24 : vector<1x128xf32> to vector<8x128xf32>
    %26 = arith.addf %23, %25 : vector<8x128xf32>
    %c0_20 = arith.constant 0 : index
    %c0_21 = arith.constant 0 : index
    %27 = vector.load %arg10[%c0_20, %c0_21] : memref<8x128xf32, #tpu.memory_space<vmem>>, vector<8x128xf32>
    tpu.vector_store %arg10[%c0_20, %c0_21], %26 {strides = array<i32>} : memref<8x128xf32, #tpu.memory_space<vmem>>, vector<8x128xf32>,
    return
  }
  func.func @transform_0(%arg0: i32) -> (i32, i32) {
    %c0_i32 = arith.constant 0 : i32
    %c0_i32_0 = arith.constant 0 : i32
    return %arg0, %c0_i32 : i32, i32
  }
  func.func @transform_1(%arg0: i32) -> (i32, i32) {
    %c0_i32 = arith.constant 0 : i32
    %c0_i32_0 = arith.constant 0 : i32
    %c0_i32_1 = arith.constant 0 : i32
    return %c0_i32, %c0_i32_0 : i32, i32
  }
  func.func @transform_2(%arg0: i32) -> (i32, i32) {
    %c0_i32 = arith.constant 0 : i32
    %c0_i32_0 = arith.constant 0 : i32
    %c0_i32_1 = arith.constant 0 : i32
    return %c0_i32, %c0_i32_0 : i32, i32
  }
  func.func @transform_3(%arg0: i32) -> (i32, i32) {
    %c0_i32 = arith.constant 0 : i32
    %c0_i32_0 = arith.constant 0 : i32
    %c0_i32_1 = arith.constant 0 : i32
    return %c0_i32, %c0_i32_0 : i32, i32
  }
  func.func @transform_4(%arg0: i32) -> (i32, i32) {
    %c0_i32 = arith.constant 0 : i32
    %c0_i32_0 = arith.constant 0 : i32
    %c0_i32_1 = arith.constant 0 : i32
    return %c0_i32, %c0_i32_0 : i32, i32
  }
  func.func @transform_5(%arg0: i32) -> (i32, i32) {
    %c0_i32 = arith.constant 0 : i32
    %c0_i32_0 = arith.constant 0 : i32
    %c0_i32_1 = arith.constant 0 : i32
    return %c0_i32, %c0_i32_0 : i32, i32
  }
  func.func @transform_6(%arg0: i32) -> (i32, i32) {
    %c0_i32 = arith.constant 0 : i32
    %c0_i32_0 = arith.constant 0 : i32
    %c0_i32_1 = arith.constant 0 : i32
    return %c0_i32, %c0_i32_0 : i32, i32
  }
  func.func @transform_7(%arg0: i32) -> (i32, i32) {
    %c0_i32 = arith.constant 0 : i32
    %c0_i32_0 = arith.constant 0 : i32
    %c0_i32_1 = arith.constant 0 : i32
    return %c0_i32, %c0_i32_0 : i32, i32
  }
  func.func @transform_8(%arg0: i32) -> (i32, i32) {
    %c0_i32 = arith.constant 0 : i32
    %c0_i32_0 = arith.constant 0 : i32
    %c0_i32_1 = arith.constant 0 : i32
    return %c0_i32, %c0_i32_0 : i32, i32
  }
  func.func @transform_9(%arg0: i32) -> (i32, i32) {
    %c0_i32 = arith.constant 0 : i32
    %c0_i32_0 = arith.constant 0 : i32
    return %arg0, %c0_i32 : i32, i32
  }
}

</mosaic_0001>

<bundles_post_ra>
// kernel: tpu_custom_call.1
= control target key start
LH: loop header
LB: loop body
LE: loop exit
PB: predicated region body
PF: predicated region fallthrough
CT: control target
= control target key end

     0   :  { %14 = vsyncpa [#allocation3], 0  ;;  %s1527_s0 = inlined_call_operand.hbm [shape: bf16[8,128], index: 0, kind: input, shape index: {}]   ;;  %s1528_s1 = inlined_call_operand.hbm [shape: bf16[128,256], index: 1, kind: input, shape index: {}]   ;;  %s1529_s2 = inlined_call_operand.vmem [shape: f32[1,256], index: 2, kind: input, shape index: {}]   ;;  %s1530_s3 = inlined_call_operand.hbm [shape: bf16[256,256], index: 3, kind: input, shape index: {}]   ;;  %s1531_s4 = inlined_call_operand.vmem [shape: f32[1,256], index: 4, kind: input, shape index: {}]   ;;  %s1532_s5 = inlined_call_operand.hbm [shape: bf16[256,256], index: 5, kind: input, shape index: {}]   ;;  %s1533_s6 = inlined_call_operand.vmem [shape: f32[1,256], index: 6, kind: input, shape index: {}]   ;;  %s1534_s7 = inlined_call_operand.hbm [shape: bf16[256,128], index: 7, kind: input, shape index: {}]   ;;  %s1535_s8 = inlined_call_operand.vmem [shape: f32[1,128], index: 8, kind: input, shape index: {}]   ;;  %s1536_s9 = inlined_call_operand.hbm [shape: f32[8,128], index: 9, kind: output, shape index: {}]  }
   0x1   :  { %15 = vsyncpa [#allocation6], 0 }
   0x2   :  { %16 = vsyncpa [#allocation9], 0 }
   0x3   :  { %17 = vsyncpa [#allocation4], 0  ;;  %s1363_s30 = smov [#allocation5]   ;;  %s1223_s13 = scalar_lea.hbm %s1528_s1, 2048 }
   0x4   :  { %s33_s10 = sshll.u32 %s1363_s30, 4  ;;  %p1224_p0 = scmp.ne.s32.totalorder %s1528_s1, %s1223_s13  ;;  %s34_s10 = int_to_ptr.vmem [resolvable:$true] %s33_s10 }
   0x5   :  { %p1227_p1 = scmp.lt.u32.totalorder %s1223_s13, %s1528_s1 }
   0x7   :  { %p1229_p2 = pnand %p1227_p1, %p1224_p0 }
   0x9   :  { %1232 = shalt.err (!%p1229_p2)
}
   0xa   :  { %s1233_s18 = scalar_lea.vmem %s34_s10, 2048  ;;  %p1238_p4 = scmp.lt.s32.totalorder %s34_s10, %s34_s10 }
   0xb   :  { %p1234_p3 = scmp.ne.s32.totalorder %s34_s10, %s1233_s18  ;;  %p1239_p5 = scmp.lt.s32.totalorder %s1233_s18, %s1233_s18 }
   0xd   :  { %p1240_p6 = por %p1239_p5, %p1238_p4 }
   0xf   :  { %p1241_p7 = pnand %p1240_p6, %p1234_p3 }
  0x11   :  { %1244 = shalt.err (!%p1241_p7)
}
  0x12   :  { %s1364_s19 = smov 128   ;;  %s1365_s20 = smov 8  }
  0x13   :  { %39 = dma.hbm_to_vmem [thread:$0]  %s1528_s1, 2048, %s34_s10, [#allocation6], %s1364_s19, %s1364_s19, %s1365_s20  }
  0x14   :  { %s1366_s23 = smov [#allocation8]   ;;  %s1367_s25 = smov [#allocation2]  }
  0x15   :  { %s61_s24 = sshll.u32 %s1366_s23, 4  ;;  %s24_s26 = sshll.u32 %s1367_s25, 4  ;;  %s62_s24 = int_to_ptr.vmem [resolvable:$true] %s61_s24  ;;  %s25_s26 = int_to_ptr.vmem [resolvable:$true] %s24_s26 }
  0x16   :  { %s1245_s29 = scalar_lea.hbm %s1532_s5, 4096 }
  0x17   :  { %p1246_p8 = scmp.ne.s32.totalorder %s1532_s5, %s1245_s29  ;;  %p1249_p9 = scmp.lt.u32.totalorder %s1245_s29, %s1532_s5 }
  0x19   :  { %p1251_p10 = pnand %p1249_p9, %p1246_p8 }
  0x1b   :  { %1254 = shalt.err (!%p1251_p10)
}
  0x1c   :  { %s1255_s1 = scalar_lea.vmem %s62_s24, 4096  ;;  %p1260_p12 = scmp.lt.s32.totalorder %s62_s24, %s62_s24 }
  0x1d   :  { %p1256_p11 = scmp.ne.s32.totalorder %s62_s24, %s1255_s1  ;;  %p1261_p13 = scmp.lt.s32.totalorder %s1255_s1, %s1255_s1 }
  0x1f   :  { %p1262_p0 = por %p1261_p13, %p1260_p12 }
  0x21   :  { %p1263_p1 = pnand %p1262_p0, %p1256_p11 }
  0x23   :  { %1266 = shalt.err (!%p1263_p1)
}
  0x24   :  { %67 = dma.hbm_to_vmem [thread:$0]  %s1532_s5, 4096, %s62_s24, [#allocation9], %s1364_s19, %s1364_s19, %s1365_s20  }
  0x25   :  { %s1267_s17 = scalar_lea.hbm %s1527_s0, 64 }
  0x26   :  { %p1268_p2 = scmp.ne.s32.totalorder %s1527_s0, %s1267_s17  ;;  %p1271_p3 = scmp.lt.u32.totalorder %s1267_s17, %s1527_s0 }
  0x28   :  { %p1273_p4 = pnand %p1271_p3, %p1268_p2 }
  0x2a   :  { %1276 = shalt.err (!%p1273_p4)
}
  0x2b   :  { %s1277_s25 = scalar_lea.vmem %s25_s26, 64  ;;  %p1282_p6 = scmp.lt.s32.totalorder %s25_s26, %s25_s26 }
  0x2c   :  { %p1278_p5 = scmp.ne.s32.totalorder %s25_s26, %s1277_s25  ;;  %p1283_p7 = scmp.lt.s32.totalorder %s1277_s25, %s1277_s25 }
  0x2e   :  { %p1284_p8 = por %p1283_p7, %p1282_p6 }
  0x30   :  { %p1285_p9 = pnand %p1284_p8, %p1278_p5 }
  0x32   :  { %1288 = shalt.err (!%p1285_p9)
}
  0x33   :  { %27 = dma.hbm_to_vmem [thread:$0]  %s1527_s0, 64, %s25_s26, [#allocation3]  }
  0x34   :  { %s1368_s27 = smov [#allocation7]   ;;  %s1369_s29 = smov [#allocation10]  }
  0x35   :  { %s47_s28 = sshll.u32 %s1368_s27, 4  ;;  %s75_s30 = sshll.u32 %s1369_s29, 4  ;;  %s48_s28 = int_to_ptr.vmem [resolvable:$true] %s47_s28  ;;  %s76_s30 = int_to_ptr.vmem [resolvable:$true] %s75_s30 }
  0x36   :  { %s1289_s13 = scalar_lea.hbm %s1530_s3, 4096 }
  0x37   :  { %p1290_p10 = scmp.ne.s32.totalorder %s1530_s3, %s1289_s13  ;;  %p1293_p11 = scmp.lt.u32.totalorder %s1289_s13, %s1530_s3 }
  0x39   :  { %p1295_p12 = pnand %p1293_p11, %p1290_p10 }
  0x3b   :  { %1298 = shalt.err (!%p1295_p12)
}
  0x3c   :  { %s1299_s0 = scalar_lea.vmem %s48_s28, 4096  ;;  %p1304_p0 = scmp.lt.s32.totalorder %s48_s28, %s48_s28 }
  0x3d   :  { %p1300_p13 = scmp.ne.s32.totalorder %s48_s28, %s1299_s0  ;;  %p1305_p1 = scmp.lt.s32.totalorder %s1299_s0, %s1299_s0 }
  0x3f   :  { %p1306_p2 = por %p1305_p1, %p1304_p0 }
  0x41   :  { %p1307_p3 = pnand %p1306_p2, %p1300_p13 }
  0x43   :  { %1310 = shalt.err (!%p1307_p3)
}
  0x44   :  { %53 = dma.hbm_to_vmem [thread:$0]  %s1530_s3, 4096, %s48_s28, [#allocation6], %s1364_s19, %s1364_s19, %s1365_s20  }
  0x45   :  { %s1311_s21 = scalar_lea.hbm %s1534_s7, 2048 }
  0x46   :  { %p1312_p4 = scmp.ne.s32.totalorder %s1534_s7, %s1311_s21  ;;  %p1315_p5 = scmp.lt.u32.totalorder %s1311_s21, %s1534_s7 }
  0x48   :  { %p1317_p6 = pnand %p1315_p5, %p1312_p4 }
  0x4a   :  { %1320 = shalt.err (!%p1317_p6)
}
  0x4b   :  { %s1321_s24 = scalar_lea.vmem %s76_s30, 2048  ;;  %p1326_p8 = scmp.lt.s32.totalorder %s76_s30, %s76_s30 }
  0x4c   :  { %p1322_p7 = scmp.ne.s32.totalorder %s76_s30, %s1321_s24  ;;  %p1327_p9 = scmp.lt.s32.totalorder %s1321_s24, %s1321_s24 }
  0x4e   :  { %p1328_p10 = por %p1327_p9, %p1326_p8 }
  0x50   :  { %p1329_p11 = pnand %p1328_p10, %p1322_p7 }
  0x52   :  { %1332 = shalt.err (!%p1329_p11)
}
  0x53   :  { %s1370_s3 = smov 64   ;;  %s1371_s19 = smov 4  }
  0x54   :  { %81 = dma.hbm_to_vmem [thread:$0]  %s1534_s7, 2048, %s76_s30, [#allocation9], %s1370_s3, %s1370_s3, %s1371_s19  }
  0x55   :  { %1355 = dma.done.wait [#allocation3], 64  }
  0x56   :  { %1356 = vsyncadd [#allocation3], 4294967232 }
  0x57   :  { %1357 = dma.done.wait [#allocation6], 6144  }
  0x58   :  { %1358 = vsyncadd [#allocation6], 4294961152 }
  0x59   :  { %1359 = dma.done.wait [#allocation9], 6144  }
  0x5a   :  { %1360 = vsyncadd [#allocation9], 4294961152  ;;  %v1372_v0 = vmov 0   ;;  %v1075_v1 = vld [vmem:[#allocation5 + $0x4] ss:$8 sps:$4 sm:$0xff]   ;;  %s1373_s12 = smov [#allocation11]  }
  0x5b   :  { %241 = vmatprep.mubr.bf16.mxu0 %v1372_v0  ;;  %v1077_v2 = vld [vmem:[#allocation5] ss:$8 sps:$4 sm:$0xff]   ;;  %209 = vmatprep.subr.bf16.mxu0 %v1075_v1  ;;  %v1078_v3 = vld [vmem:[#allocation5 + $0x14] ss:$8 sps:$4 sm:$0xff]   ;;  %v1080_v4 = vld [vmem:[#allocation5 + $0x10] ss:$8 sps:$4 sm:$0xff]  }
  0x5c   :  { %210 = vmatpush1.bf16.msra.mxu0 %v1077_v2  ;;  %v1081_v5 = vld [vmem:[#allocation5 + $0x24] ss:$8 sps:$4 sm:$0xff]   ;;  %v1083_v6 = vld [vmem:[#allocation5 + $0x20] ss:$8 sps:$4 sm:$0xff]   ;;  %v1084_v7 = vld [vmem:[#allocation5 + $0x34] ss:$8 sps:$4 sm:$0xff]  }
  0x5d   :  { %211 = vmatprep.subr.bf16.mxu0 %v1078_v3  ;;  %v1086_v8 = vld [vmem:[#allocation5 + $0x30] ss:$8 sps:$4 sm:$0xff]   ;;  %v1087_v9 = vld [vmem:[#allocation5 + $0x44] ss:$8 sps:$4 sm:$0xff]   ;;  %v1101_v11 = vld [vmem:[#allocation7] ss:$8 sps:$4 sm:$0xff]  }
  0x5e   :  { %v1099_v10 = vld [vmem:[#allocation7 + $0x4] ss:$8 sps:$4 sm:$0xff]   ;;  %v1102_v12 = vld [vmem:[#allocation7 + $0x14] ss:$8 sps:$4 sm:$0xff]   ;;  %v1089_v13 = vld [vmem:[#allocation5 + $0x40] ss:$8 sps:$4 sm:$0xff]  }
  0x5f   :  { %458 = vmatprep.subr.bf16.mxu1 %v1099_v10  ;;  %v1104_v14 = vld [vmem:[#allocation7 + $0x10] ss:$8 sps:$4 sm:$0xff]   ;;  %v1105_v15 = vld [vmem:[#allocation7 + $0x24] ss:$8 sps:$4 sm:$0xff]   ;;  %v1090_v16 = vld [vmem:[#allocation5 + $0x54] ss:$8 sps:$4 sm:$0xff]   ;;  %v119_v10 = vlaneseq }
  0x60   :  { %212 = vmatpush1.bf16.msra.mxu0 %v1080_v4  ;;  %459 = vmatpush1.bf16.msra.mxu1 %v1101_v11  ;;  %v1092_v17 = vld [vmem:[#allocation5 + $0x50] ss:$8 sps:$4 sm:$0xff]   ;;  %v1107_v18 = vld [vmem:[#allocation7 + $0x20] ss:$8 sps:$4 sm:$0xff]   ;;  %v1108_v19 = vld [vmem:[#allocation7 + $0x34] ss:$8 sps:$4 sm:$0xff]  }
  0x61   :  { %213 = vmatprep.subr.bf16.mxu0 %v1081_v5  ;;  %460 = vmatprep.subr.bf16.mxu1 %v1102_v12  ;;  %v1093_v20 = vld [vmem:[#allocation5 + $0x64] ss:$8 sps:$4 sm:$0xff]   ;;  %v1095_v21 = vld [vmem:[#allocation5 + $0x60] ss:$8 sps:$4 sm:$0xff]   ;;  %v1110_v22 = vld [vmem:[#allocation7 + $0x30] ss:$8 sps:$4 sm:$0xff]  }
  0x62   :  { %v1111_v23 = vld [vmem:[#allocation7 + $0x44] ss:$8 sps:$4 sm:$0xff]   ;;  %v1096_v24 = vld [vmem:[#allocation5 + $0x74] ss:$8 sps:$4 sm:$0xff]   ;;  %v1098_v25 = vld [vmem:[#allocation5 + $0x70] ss:$8 sps:$4 sm:$0xff]  }
  0x63   :  { %v1113_v26 = vld [vmem:[#allocation7 + $0x40] ss:$8 sps:$4 sm:$0xff]   ;;  %v1114_v27 = vld [vmem:[#allocation7 + $0x54] ss:$8 sps:$4 sm:$0xff]   ;;  %v1116_v28 = vld [vmem:[#allocation7 + $0x50] ss:$8 sps:$4 sm:$0xff]  }
  0x64   :  { %214 = vmatpush1.bf16.msra.mxu0 %v1083_v6  ;;  %461 = vmatpush1.bf16.msra.mxu1 %v1104_v14  ;;  %v100_v29 = vld [vmem:[#allocation2] sm:$0xf]  ;;  %v1117_v30 = vld [vmem:[#allocation7 + $0x64] ss:$8 sps:$4 sm:$0xff]   ;;  %v1119_v31 = vld [vmem:[#allocation7 + $0x60] ss:$8 sps:$4 sm:$0xff]  }
  0x65   :  { %215 = vmatprep.subr.bf16.mxu0 %v1084_v7  ;;  %462 = vmatprep.subr.bf16.mxu1 %v1105_v15  ;;  %v1120_v32 = vld [vmem:[#allocation7 + $0x74] ss:$8 sps:$4 sm:$0xff]   ;;  %v1122_v33 = vld [vmem:[#allocation7 + $0x70] ss:$8 sps:$4 sm:$0xff]   ;;  %v1123_v34 = vld [vmem:[#allocation7 + $0x84] ss:$8 sps:$4 sm:$0xff]  }
  0x66   :  { %v1125_v35 = vld [vmem:[#allocation7 + $0x80] ss:$8 sps:$4 sm:$0xff]   ;;  %v1126_v36 = vld [vmem:[#allocation7 + $0x94] ss:$8 sps:$4 sm:$0xff]   ;;  %v1128_v37 = vld [vmem:[#allocation7 + $0x90] ss:$8 sps:$4 sm:$0xff]  }
  0x67   :  { %v1129_v38 = vld [vmem:[#allocation7 + $0xa4] ss:$8 sps:$4 sm:$0xff]   ;;  %v1131_v39 = vld [vmem:[#allocation7 + $0xa0] ss:$8 sps:$4 sm:$0xff]   ;;  %v1132_v40 = vld [vmem:[#allocation7 + $0xb4] ss:$8 sps:$4 sm:$0xff]  }
  0x68   :  { %216 = vmatpush1.bf16.msra.mxu0 %v1086_v8  ;;  %463 = vmatpush1.bf16.msra.mxu1 %v1107_v18  ;;  %v1134_v41 = vld [vmem:[#allocation7 + $0xb0] ss:$8 sps:$4 sm:$0xff]   ;;  %v1135_v42 = vld [vmem:[#allocation7 + $0xc4] ss:$8 sps:$4 sm:$0xff]   ;;  %v1137_v43 = vld [vmem:[#allocation7 + $0xc0] ss:$8 sps:$4 sm:$0xff]  }
  0x69   :  { %217 = vmatprep.subr.bf16.mxu0 %v1087_v9  ;;  %464 = vmatprep.subr.bf16.mxu1 %v1108_v19  ;;  %v1138_v44 = vld [vmem:[#allocation7 + $0xd4] ss:$8 sps:$4 sm:$0xff]   ;;  %v1140_v45 = vld [vmem:[#allocation7 + $0xd0] ss:$8 sps:$4 sm:$0xff]   ;;  %v1141_v46 = vld [vmem:[#allocation7 + $0xe4] ss:$8 sps:$4 sm:$0xff]  }
  0x6a   :  { %v1143_v47 = vld [vmem:[#allocation7 + $0xe0] ss:$8 sps:$4 sm:$0xff]   ;;  %v1144_v48 = vld [vmem:[#allocation7 + $0xf4] ss:$8 sps:$4 sm:$0xff]   ;;  %v1146_v49 = vld [vmem:[#allocation7 + $0xf0] ss:$8 sps:$4 sm:$0xff]  }
  0x6b   :  { %v1147_v50 = vld [vmem:[#allocation8] ss:$8 sps:$4 sm:$0xff]   ;;  %v1149_v51 = vld [vmem:[#allocation8 + $0x4] ss:$8 sps:$4 sm:$0xff]   ;;  %v1152_v52 = vld [vmem:[#allocation8 + $0x14] ss:$8 sps:$4 sm:$0xff]  }
  0x6c   :  { %218 = vmatpush1.bf16.msra.mxu0 %v1089_v13  ;;  %465 = vmatpush1.bf16.msra.mxu1 %v1110_v22  ;;  %v1150_v53 = vld [vmem:[#allocation8 + $0x10] ss:$8 sps:$4 sm:$0xff]   ;;  %v1155_v54 = vld [vmem:[#allocation8 + $0x24] ss:$8 sps:$4 sm:$0xff]   ;;  %v1153_v55 = vld [vmem:[#allocation8 + $0x20] ss:$8 sps:$4 sm:$0xff]  }
  0x6d   :  { %219 = vmatprep.subr.bf16.mxu0 %v1090_v16  ;;  %466 = vmatprep.subr.bf16.mxu1 %v1111_v23  ;;  %v1158_v56 = vld [vmem:[#allocation8 + $0x34] ss:$8 sps:$4 sm:$0xff]   ;;  %v1156_v57 = vld [vmem:[#allocation8 + $0x30] ss:$8 sps:$4 sm:$0xff]   ;;  %v1161_v58 = vld [vmem:[#allocation8 + $0x44] ss:$8 sps:$4 sm:$0xff]  }
  0x6e   :  { %v1159_v59 = vld [vmem:[#allocation8 + $0x40] ss:$8 sps:$4 sm:$0xff]   ;;  %v1164_v60 = vld [vmem:[#allocation8 + $0x54] ss:$8 sps:$4 sm:$0xff]   ;;  %v1162_v61 = vld [vmem:[#allocation8 + $0x50] ss:$8 sps:$4 sm:$0xff]  }
  0x6f   :  { %v1167_v62 = vld [vmem:[#allocation8 + $0x64] ss:$8 sps:$4 sm:$0xff]   ;;  %v1165_v63 = vld [vmem:[#allocation8 + $0x60] ss:$8 sps:$4 sm:$0xff]   ;;  %v1170_v0 = vld [vmem:[#allocation8 + $0x74] ss:$8 sps:$4 sm:$0xff]  }
  0x70   :  { %220 = vmatpush1.bf16.msra.mxu0 %v1092_v17  ;;  %467 = vmatpush1.bf16.msra.mxu1 %v1113_v26  ;;  %v1168_v1 = vld [vmem:[#allocation8 + $0x70] ss:$8 sps:$4 sm:$0xff]   ;;  %v1173_v2 = vld [vmem:[#allocation8 + $0x84] ss:$8 sps:$4 sm:$0xff]   ;;  %v1171_v3 = vld [vmem:[#allocation8 + $0x80] ss:$8 sps:$4 sm:$0xff]  }
  0x71   :  { %221 = vmatprep.subr.bf16.mxu0 %v1093_v20  ;;  %468 = vmatprep.subr.bf16.mxu1 %v1114_v27  ;;  %v1176_v4 = vld [vmem:[#allocation8 + $0x94] ss:$8 sps:$4 sm:$0xff]   ;;  %v1174_v5 = vld [vmem:[#allocation8 + $0x90] ss:$8 sps:$4 sm:$0xff]   ;;  %v1179_v6 = vld [vmem:[#allocation8 + $0xa4] ss:$8 sps:$4 sm:$0xff]  }
  0x72   :  { %v1177_v7 = vld [vmem:[#allocation8 + $0xa0] ss:$8 sps:$4 sm:$0xff]   ;;  %v1182_v8 = vld [vmem:[#allocation8 + $0xb4] ss:$8 sps:$4 sm:$0xff]   ;;  %v1180_v9 = vld [vmem:[#allocation8 + $0xb0] ss:$8 sps:$4 sm:$0xff]  }
  0x73   :  { %v120_v11 = vshrl.u32 %v119_v10, 7  ;;  %v117_v13 = vld [vmem:[%s1529_s2] sm:$0x3]  ;;  %v1185_v27 = vld [vmem:[#allocation8 + $0xc4] ss:$8 sps:$4 sm:$0xff]   ;;  %s934_s13 = sshll.u32 %s1373_s12, 4  ;;  %s935_s13 = int_to_ptr.vmem [resolvable:$true] %s934_s13 }
  0x74   :  { %222 = vmatpush1.bf16.msra.mxu0 %v1095_v21  ;;  %469 = vmatpush1.bf16.msra.mxu1 %v1116_v28  ;;  %v1183_v28 = vld [vmem:[#allocation8 + $0xc0] ss:$8 sps:$4 sm:$0xff]   ;;  %s1333_s1 = scalar_lea.vmem %s935_s13, 128  ;;  %p1338_p13 = scmp.lt.s32.totalorder %s935_s13, %s935_s13 }
  0x75   :  { %223 = vmatprep.subr.bf16.mxu0 %v1096_v24  ;;  %470 = vmatprep.subr.bf16.mxu1 %v1117_v30  ;;  %v1493_v12 = vsub.s32 0, %v120_v11  ;;  %v1498_v14 = vsub.s32 1, %v120_v11  ;;  %v1186_v30 = vld [vmem:[#allocation8 + $0xd0] ss:$8 sps:$4 sm:$0xff]   ;;  %p1334_p12 = scmp.ne.s32.totalorder %s935_s13, %s1333_s1  ;;  %p1339_p0 = scmp.lt.s32.totalorder %s1333_s1, %s1333_s1 }
  0x77   :  { %v122_v15 = vrot.slane %v117_v13, %v1493_v12  ;;  %v126_v16 = vrot.slane %v117_v13, %v1498_v14  ;;  %p1340_p1 = por %p1339_p0, %p1338_p13 }
  0x78   :  { %224 = vmatpush1.bf16.msra.mxu0 %v1098_v25  ;;  %471 = vmatpush1.bf16.msra.mxu1 %v1119_v31  ;;  %v1191_v31 = vld [vmem:[#allocation8 + $0xe4] ss:$8 sps:$4 sm:$0xff]  }
  0x79   :  { %472 = vmatprep.subr.bf16.mxu1 %v1120_v32  ;;  %707 = vmatprep.subr.bf16.mxu0 %v1149_v51  ;;  %v1189_v32 = vld [vmem:[#allocation8 + $0xe0] ss:$8 sps:$4 sm:$0xff]   ;;  %p1341_p2 = pnand %p1340_p1, %p1334_p12 }
  0x7b   :  { %242 = vmatmul.mubr.bf16.vlgmr.msra.gmra.mrb[0].mxu0 %v100_v29  ;;  %v1188_v29 = vld [vmem:[#allocation8 + $0xd4] ss:$8 sps:$4 sm:$0xff]  }
  0x7c   :  { %473 = vmatpush1.bf16.msra.mxu1 %v1122_v33  ;;  %708 = vmatpush1.bf16.msra.mxu0 %v1147_v50  ;;  %v1194_v33 = vld [vmem:[#allocation8 + $0xf4] ss:$8 sps:$4 sm:$0xff]  }
  0x7d   :  { %474 = vmatprep.subr.bf16.mxu1 %v1123_v34  ;;  %709 = vmatprep.subr.bf16.mxu0 %v1152_v52  ;;  %v1192_v34 = vld [vmem:[#allocation8 + $0xf0] ss:$8 sps:$4 sm:$0xff]  }
  0x80   :  { %475 = vmatpush1.bf16.msra.mxu1 %v1125_v35  ;;  %710 = vmatpush1.bf16.msra.mxu0 %v1150_v53  ;;  %v1195_v35 = vld [vmem:[#allocation10 + $0x40] sm:$0xff]  }
  0x81   :  { %476 = vmatprep.subr.bf16.mxu1 %v1126_v36  ;;  %711 = vmatprep.subr.bf16.mxu0 %v1155_v54  ;;  %v1196_v36 = vld [vmem:[#allocation10] sm:$0xff]  }
  0x84   :  { %477 = vmatpush1.bf16.msra.mxu1 %v1128_v37  ;;  %712 = vmatpush1.bf16.msra.mxu0 %v1153_v55  ;;  %v1197_v37 = vld [vmem:[#allocation10 + $0x48] sm:$0xff]  }
  0x85   :  { %478 = vmatprep.subr.bf16.mxu1 %v1129_v38  ;;  %713 = vmatprep.subr.bf16.mxu0 %v1158_v56  ;;  %v1198_v38 = vld [vmem:[#allocation10 + $0x8] sm:$0xff]   ;;  %v1203_v56 = vld [vmem:[#allocation10 + $0x60] sm:$0xff]  }
  0x88   :  { %479 = vmatpush1.bf16.msra.mxu1 %v1131_v39  ;;  %714 = vmatpush1.bf16.msra.mxu0 %v1156_v57  ;;  %v1199_v39 = vld [vmem:[#allocation10 + $0x50] sm:$0xff]   ;;  %v1204_v57 = vld [vmem:[#allocation10 + $0x20] sm:$0xff]  }
  0x89   :  { %480 = vmatprep.subr.bf16.mxu1 %v1132_v40  ;;  %715 = vmatprep.subr.bf16.mxu0 %v1161_v58  ;;  %v1200_v40 = vld [vmem:[#allocation10 + $0x10] sm:$0xff]   ;;  %v1205_v58 = vld [vmem:[#allocation10 + $0x68] sm:$0xff]  }
  0x8c   :  { %481 = vmatpush1.bf16.msra.mxu1 %v1134_v41  ;;  %716 = vmatpush1.bf16.msra.mxu0 %v1159_v59  ;;  %v1201_v41 = vld [vmem:[#allocation10 + $0x58] sm:$0xff]   ;;  %v1206_v59 = vld [vmem:[#allocation10 + $0x28] sm:$0xff]  }
  0x8d   :  { %482 = vmatprep.subr.bf16.mxu1 %v1135_v42  ;;  %717 = vmatprep.subr.bf16.mxu0 %v1164_v60  ;;  %v1202_v42 = vld [vmem:[#allocation10 + $0x18] sm:$0xff]   ;;  %v1207_v60 = vld [vmem:[#allocation10 + $0x70] sm:$0xff]  }
  0x90   :  { %483 = vmatpush1.bf16.msra.mxu1 %v1137_v43  ;;  %718 = vmatpush1.bf16.msra.mxu0 %v1162_v61  ;;  %v286_v43 = vld [vmem:[%s1531_s4] sm:$0x3]  ;;  %v1208_v61 = vld [vmem:[#allocation10 + $0x30] sm:$0xff]  }
  0x91   :  { %484 = vmatprep.subr.bf16.mxu1 %v1138_v44  ;;  %719 = vmatprep.subr.bf16.mxu0 %v1167_v62  ;;  %v291_v44 = vrot.slane %v286_v43, %v1493_v12  ;;  %v1209_v62 = vld [vmem:[#allocation10 + $0x78] sm:$0xff]  }
  0x94   :  { %485 = vmatpush1.bf16.msra.mxu1 %v1140_v45  ;;  %720 = vmatpush1.bf16.msra.mxu0 %v1165_v63  ;;  %v295_v45 = vrot.slane %v286_v43, %v1498_v14  ;;  %v1210_v63 = vld [vmem:[#allocation10 + $0x38] sm:$0xff]  }
  0x95   :  { %486 = vmatprep.subr.bf16.mxu1 %v1141_v46  ;;  %721 = vmatprep.subr.bf16.mxu0 %v1170_v0  ;;  %v535_v0 = vld [vmem:[%s1533_s6] sm:$0x3] }
  0x98   :  { %487 = vmatpush1.bf16.msra.mxu1 %v1143_v47  ;;  %722 = vmatpush1.bf16.msra.mxu0 %v1168_v1  ;;  %v540_v1 = vrot.slane %v535_v0, %v1493_v12  ;;  %v1025_v12 = vld [vmem:[%s1535_s8] ss:$0 sm:$0xff] }
  0x99   :  { %488 = vmatprep.subr.bf16.mxu1 %v1144_v48  ;;  %723 = vmatprep.subr.bf16.mxu0 %v1173_v2  ;;  %v544_v2 = vrot.slane %v535_v0, %v1498_v14 }
  0x9c   :  { %489 = vmatpush1.bf16.msra.mxu1 %v1146_v49  ;;  %724 = vmatpush1.bf16.msra.mxu0 %v1171_v3 }
  0x9d   :  { %725 = vmatprep.subr.bf16.mxu0 %v1176_v4  ;;  %1042 = vmatprep.subr.bf16.mxu1 %v1195_v35 }
  0xa0   :  { %726 = vmatpush1.bf16.msra.mxu0 %v1174_v5 }
  0xa1   :  { %727 = vmatprep.subr.bf16.mxu0 %v1179_v6 }
  0xa4   :  { %728 = vmatpush1.bf16.msra.mxu0 %v1177_v7 }
  0xa5   :  { %729 = vmatprep.subr.bf16.mxu0 %v1182_v8 }
  0xa8   :  { %730 = vmatpush1.bf16.msra.mxu0 %v1180_v9 }
  0xa9   :  { %731 = vmatprep.subr.bf16.mxu0 %v1185_v27 }
  0xac   :  { %732 = vmatpush1.bf16.msra.mxu0 %v1183_v28 }
  0xad   :  { %733 = vmatprep.subr.bf16.mxu0 %v1188_v29 }
  0xb0   :  { %734 = vmatpush1.bf16.msra.mxu0 %v1186_v30 }
  0xb1   :  { %735 = vmatprep.subr.bf16.mxu0 %v1191_v31 }
  0xb4   :  { %736 = vmatpush1.bf16.msra.mxu0 %v1189_v32 }
  0xb5   :  { %737 = vmatprep.subr.bf16.mxu0 %v1194_v33 }
  0xb8   :  { %738 = vmatpush1.bf16.msra.mxu0 %v1192_v34 }
 0x14e   :  { %v243_v17 = vpop.f32.mrb[0].mxu0 }
 0x14f   :  { %v244_v18 = vadd.f32 %v243_v17, %v122_v15  ;;  %v245_v19 = vpop.f32.mrb[1].mxu0 }
 0x150   :  { %v246_v20 = vadd.f32 %v245_v19, %v126_v16  ;;  %v247_v21 = vpop.f32.mrb[2].mxu0 }
 0x151   :  { %1211 = vtanh.f32 %v244_v18  ;;  %v248_v22 = vpop.f32.mrb[3].mxu0 }
 0x152   :  { %1213 = vtanh.f32 %v246_v20 }
 0x15b   :  { %v1212_v23 = vpop.eup %1211 }
 0x15c   :  { %v1214_v24 = vpop.eup %1213  ;;  %v252_v26 = vpack.c.bf16 %v1212_v23, %v1212_v23 }
 0x15d   :  { %v253_v25 = vpack.c.bf16 %v1214_v24, %v1214_v24 }
 0x15f   :  { %490 = vmatprep.mubr.bf16.mxu1 %v253_v25 }
 0x160   :  { %491 = vmatmul.mubr.bf16.vlgmr.msra.gmra.mrb[0].mxu1 %v252_v26 }
 0x161   :  { %1043 = vmatpush3.bf16.msra.mxu1 %v1196_v36 }
 0x162   :  { %1044 = vmatprep.subr.bf16.mxu1 %v1197_v37 }
 0x165   :  { %1045 = vmatpush3.bf16.msra.mxu1 %v1198_v38 }
 0x166   :  { %1046 = vmatprep.subr.bf16.mxu1 %v1199_v39 }
 0x169   :  { %1047 = vmatpush3.bf16.msra.mxu1 %v1200_v40 }
 0x16a   :  { %1048 = vmatprep.subr.bf16.mxu1 %v1201_v41 }
 0x16d   :  { %1049 = vmatpush3.bf16.msra.mxu1 %v1202_v42 }
 0x16e   :  { %1050 = vmatprep.subr.bf16.mxu1 %v1203_v56 }
 0x171   :  { %1051 = vmatpush3.bf16.msra.mxu1 %v1204_v57 }
 0x172   :  { %1052 = vmatprep.subr.bf16.mxu1 %v1205_v58 }
 0x175   :  { %1053 = vmatpush3.bf16.msra.mxu1 %v1206_v59 }
 0x176   :  { %1054 = vmatprep.subr.bf16.mxu1 %v1207_v60 }
 0x179   :  { %1055 = vmatpush3.bf16.msra.mxu1 %v1208_v61 }
 0x17a   :  { %1056 = vmatprep.subr.bf16.mxu1 %v1209_v62 }
 0x17d   :  { %1057 = vmatpush3.bf16.msra.mxu1 %v1210_v63 }
 0x233   :  { %v492_v46 = vpop.f32.mrb[0].mxu1 }
 0x234   :  { %v493_v47 = vadd.f32 %v492_v46, %v291_v44  ;;  %v494_v48 = vpop.f32.mrb[1].mxu1 }
 0x235   :  { %v495_v49 = vadd.f32 %v494_v48, %v295_v45  ;;  %v496_v50 = vpop.f32.mrb[2].mxu1 }
 0x236   :  { %1215 = vtanh.f32 %v493_v47  ;;  %v497_v51 = vpop.f32.mrb[3].mxu1 }
 0x237   :  { %1217 = vtanh.f32 %v495_v49 }
 0x240   :  { %v1216_v52 = vpop.eup %1215 }
 0x241   :  { %v1218_v53 = vpop.eup %1217  ;;  %v501_v55 = vpack.c.bf16 %v1216_v52, %v1216_v52 }
 0x242   :  { %v502_v54 = vpack.c.bf16 %v1218_v53, %v1218_v53 }
 0x244   :  { %739 = vmatprep.mubr.bf16.mxu0 %v502_v54 }
 0x245   :  { %740 = vmatmul.mubr.bf16.vlgmr.msra.gmra.mrb[4].mxu0 %v501_v55 }
 0x318   :  { %v741_v3 = vpop.f32.mrb[4].mxu0 }
 0x319   :  { %v742_v4 = vadd.f32 %v741_v3, %v540_v1  ;;  %v743_v5 = vpop.f32.mrb[5].mxu0 }
 0x31a   :  { %v744_v6 = vadd.f32 %v743_v5, %v544_v2  ;;  %v745_v7 = vpop.f32.mrb[6].mxu0 }
 0x31b   :  { %1219 = vtanh.f32 %v742_v4  ;;  %v746_v8 = vpop.f32.mrb[7].mxu0 }
 0x31c   :  { %1221 = vtanh.f32 %v744_v6 }
 0x325   :  { %v1220_v9 = vpop.eup %1219 }
 0x326   :  { %v1222_v10 = vpop.eup %1221  ;;  %v750_v13 = vpack.c.bf16 %v1220_v9, %v1220_v9 }
 0x327   :  { %v751_v11 = vpack.c.bf16 %v1222_v10, %v1222_v10 }
 0x329   :  { %919 = vmatprep.mubr.bf16.mxu1 %v751_v11 }
 0x32a   :  { %920 = vmatmul.mubr.bf16.vlgmr.msra.gmra.mrb[4].mxu1 %v750_v13 }
 0x3fd   :  { %v1058_v15 = vpop.f32.mrb[4].mxu1 }
 0x3fe   :  { %v1059_v14 = vpop.f32.mrb[5].mxu1 }
 0x3ff   :  { %v1060_v16 = vadd.f32 %v1059_v14, %v1058_v15  ;;  %v1061_v17 = vpop.f32.mrb[6].mxu1 }
 0x400   :  { %v1062_v18 = vpop.f32.mrb[7].mxu1 }
 0x401   :  { %v922_v19 = vadd.f32 %v1060_v16, %v1025_v12 }
 0x403   :  { %927 = vst [vmem:[#allocation11] sm:$0xff] %v922_v19 }
 0x404   :  { %1344 = shalt.err (!%p1341_p2)
}
 0x405   :  { %s1345_s8 = scalar_lea.hbm %s1536_s9, 128 }
 0x406   :  { %p1346_p3 = scmp.ne.s32.totalorder %s1536_s9, %s1345_s8  ;;  %p1349_p4 = scmp.lt.u32.totalorder %s1345_s8, %s1536_s9 }
 0x408   :  { %p1351_p5 = pnand %p1349_p4, %p1346_p3 }
 0x40a   :  { %1354 = shalt.err (!%p1351_p5)
}
 0x40b   :  { %937 = dma.vmem_to_hbm [thread:$0]  %s935_s13, 128, %s1536_s9, [#allocation4]  }
 0x40c   :  { %1361 = dma.done.wait [#allocation4], 128  }
 0x40d   :  { %1362 = vsyncadd [#allocation4], 4294967168 }
 0x40e   :  { %941 = vsyncpa [#allocation3], 1 }
 0x40f   :  { %942 = vsyncpa [#allocation6], 1 }
 0x410   :  { %943 = vsyncpa [#allocation9], 1 }
 0x411   :  { %944 = vsyncpa [#allocation4], 1 }

</bundles_post_ra>
